<compile_context>
chip_gen: v7x
topology: tpu7x:2x2x1
jax: 0.10.0
libtpu: 0.0.40
codegen_flags: <defaults>
</compile_context>

<pallas_src>
import functools

import jax
import jax.numpy as jnp
from jax.experimental import pallas as pl
from jax.experimental.pallas import tpu as pltpu


def _round_up(v, m):
    return (v + m - 1) // m * m


def _scoped_vmem_limit():
    # v5e/v6e: 128 MiB physical VMEM -> ~112 MiB scoped; v7x: 64 MiB -> ~48 MiB.
    try:
        cap = int(pltpu.get_tpu_info().vmem_capacity_bytes)
    except Exception:
        cap = 64 * 1024 * 1024
    return max(32 * 1024 * 1024, min(cap - (16 << 20), 112 << 20))


# ----------------------------------------------------------------------------
# Kernel 1: fused double RMSNorm (outer MoEBlock.rms_norm + inner MoELayer.rms_norm)
#           + router logits, token-tiled, logits lane-padded to a multiple of 128.
# ----------------------------------------------------------------------------
def _rmsnorm_router_kernel(x_ref, g1_ref, g2_ref, wr_ref, br_ref, logits_ref,
                           *, eps1, eps2):
    x = x_ref[...].astype(jnp.float32)                                  # (TN, D)
    h = g1_ref[...] * (x / jnp.sqrt(jnp.mean(x * x, axis=-1, keepdims=True) + eps1))
    h2 = g2_ref[...] * (h / jnp.sqrt(jnp.mean(h * h, axis=-1, keepdims=True) + eps2))
    logits_ref[...] = (
        jnp.dot(h2, wr_ref[...], preferred_element_type=jnp.float32) + br_ref[...]
    )


# ----------------------------------------------------------------------------
# Kernel 2: expert compute over grid (token_tile, expert, ffn_block).
#   out[tile] = x[tile] (residual) + sum_e gate[tile, e] * SwiGLUExpert_e(h2[tile])
# The two RMSNorms are recomputed per tile (cheap VPU work) instead of round-
# tripping h2 through HBM.  Expert weights stay in (out_features, in_features)
# layout; dot_general contracts the `in` axis (MXU-native trans_b).
# ----------------------------------------------------------------------------
def _moe_expert_kernel(cnt_ref, x_ref, g1_ref, g2_ref, gate_ref,
                       w1_ref, b1_ref, w3_ref, b3_ref, w2_ref, b2_ref,
                       o_ref, *, eps1, eps2, num_experts, compute_dtype):
    i = pl.program_id(0)   # token tile   (parallel)
    e = pl.program_id(1)   # expert       (reduction, accumulated in o_ref)
    f = pl.program_id(2)   # d_ffn block  (reduction, accumulated in o_ref)

    @pl.when((e == 0) & (f == 0))
    def _init():
        o_ref[...] = x_ref[...]          # residual lands directly in the output

    routed = cnt_ref[i * num_experts + e] > 0

    @pl.when(routed)                      # skip all MXU work for unrouted experts
    def _compute():
        x = x_ref[...].astype(jnp.float32)
        h = g1_ref[...] * (x / jnp.sqrt(jnp.mean(x * x, axis=-1, keepdims=True) + eps1))
        h2 = g2_ref[...] * (h / jnp.sqrt(jnp.mean(h * h, axis=-1, keepdims=True) + eps2))
        h2c = h2.astype(compute_dtype)

        dn = (((1,), (1,)), ((), ()))     # contract the `in` axis of (out, in) weights
        u = jax.lax.dot_general(h2c, w1_ref[...], dn,
                                preferred_element_type=jnp.float32) + b1_ref[...]
        v = jax.lax.dot_general(h2c, w3_ref[...], dn,
                                preferred_element_type=jnp.float32) + b3_ref[...]
        g = (jax.nn.silu(u) * v).astype(compute_dtype)                  # SwiGLU
        y = jax.lax.dot_general(g, w2_ref[...], dn,
                                preferred_element_type=jnp.float32)
        y = y + b2_ref[...] * (f == 0).astype(jnp.float32)              # bias once per expert
        o_ref[...] += gate_ref[...] * y                                 # (TN,1) * (TN,D)


# ----------------------------------------------------------------------------
# Wrapper
# ----------------------------------------------------------------------------
def moe_block_forward(x, params, *, eps_outer, eps_inner, top_k,
                      block_n=256, block_f=512, compute_dtype=jnp.bfloat16):
    B, T, D = x.shape
    N = B * T
    E, F, _ = params["w1"].shape

    TN = min(_round_up(block_n, 8), _round_up(N, 8))                    # token tile
    N_pad = _round_up(N, TN)
    NT = N_pad // TN
    TF = block_f if (block_f < F and F % block_f == 0 and block_f % 128 == 0) else F
    KF = F // TF                                                        # d_ffn blocks
    Ep = _round_up(E, 128)                                              # lane-dense logits
    vmem_limit = _scoped_vmem_limit()

    x_flat = x.reshape(N, D).astype(jnp.float32)
    x_pad = x_flat if N_pad == N else jnp.zeros((N_pad, D), jnp.float32).at[:N].set(x_flat)

    g1 = params["rms_outer_w"].reshape(1, D).astype(jnp.float32)
    g2 = params["rms_inner_w"].reshape(1, D).astype(jnp.float32)
    wr_pad = jnp.zeros((D, Ep), jnp.float32).at[:, :E].set(
        params["router_w"].T.astype(jnp.float32))
    br_pad = jnp.zeros((1, Ep), jnp.float32).at[:, :E].set(
        params["router_b"].reshape(1, E).astype(jnp.float32))

    # --- kernel 1: token-tiled fused RMSNorm x2 + router logits ---
    logits_pad = pl.pallas_call(
        functools.partial(_rmsnorm_router_kernel, eps1=eps_outer, eps2=eps_inner),
        out_shape=jax.ShapeDtypeStruct((N_pad, Ep), jnp.float32),
        grid=(NT,),
        in_specs=[
            pl.BlockSpec((TN, D), lambda i: (i, 0)),
            pl.BlockSpec((1, D), lambda i: (0, 0)),
            pl.BlockSpec((1, D), lambda i: (0, 0)),
            pl.BlockSpec((D, Ep), lambda i: (0, 0)),
            pl.BlockSpec((1, Ep), lambda i: (0, 0)),
        ],
        out_specs=pl.BlockSpec((TN, Ep), lambda i: (i, 0)),
        compiler_params=pltpu.CompilerParams(
            dimension_semantics=("parallel",),
            vmem_limit_bytes=vmem_limit),
    )(x_pad, g1, g2, wr_pad, br_pad)

    # --- top-k gating glue (tiny, plain JAX; one-hot instead of scatter-add) ---
    logits = logits_pad[:, :E]
    probs = jax.nn.softmax(logits, axis=-1)
    top_v, top_i = jax.lax.top_k(probs, top_k)
    top_w = top_v / jnp.sum(top_v, axis=-1, keepdims=True)
    one_hot = (top_i[..., None] == jnp.arange(E)[None, None, :]).astype(jnp.float32)
    gates = jnp.sum(one_hot * top_w[..., None], axis=1)                 # (N_pad, E)
    gates = jnp.where((jnp.arange(N_pad) < N)[:, None], gates, 0.0)     # mask padded rows
    gates_t = gates.T[:, :, None]                                       # (E, N_pad, 1)
    counts = jnp.any(gates.reshape(NT, TN, E) > 0.0,
                     axis=1).astype(jnp.int32).reshape(NT * E)          # SMEM prefetch

    # Expert weights stay in native (out, in) layout; cast once for the MXU.
    cdt = jnp.dtype(compute_dtype)
    w1 = params["w1"].astype(cdt)                                       # (E, F, D)
    w3 = params["w3"].astype(cdt)                                       # (E, F, D)
    w2 = params["w2"].astype(cdt)                                       # (E, D, F)
    b1 = params["b1"].reshape(E, 1, F).astype(jnp.float32)
    b3 = params["b3"].reshape(E, 1, F).astype(jnp.float32)
    b2 = params["b2"].reshape(E, 1, D).astype(jnp.float32)

    # --- kernel 2: expert compute + gated accumulate + residual ---
    out_pad = pl.pallas_call(
        functools.partial(_moe_expert_kernel, eps1=eps_outer, eps2=eps_inner,
                          num_experts=E, compute_dtype=cdt),
        out_shape=jax.ShapeDtypeStruct((N_pad, D), jnp.float32),
        grid_spec=pltpu.PrefetchScalarGridSpec(
            num_scalar_prefetch=1,
            grid=(NT, E, KF),
            in_specs=[
                pl.BlockSpec((TN, D), lambda i, e, f, c: (i, 0)),        # x (residual + norm src)
                pl.BlockSpec((1, D), lambda i, e, f, c: (0, 0)),         # outer RMSNorm gain
                pl.BlockSpec((1, D), lambda i, e, f, c: (0, 0)),         # inner RMSNorm gain
                pl.BlockSpec((None, TN, 1), lambda i, e, f, c: (e, i, 0)),   # gate column
                pl.BlockSpec((None, TF, D), lambda i, e, f, c: (e, f, 0)),   # W1  (F,D) block
                pl.BlockSpec((None, 1, TF), lambda i, e, f, c: (e, 0, f)),   # b1
                pl.BlockSpec((None, TF, D), lambda i, e, f, c: (e, f, 0)),   # W3  (F,D) block
                pl.BlockSpec((None, 1, TF), lambda i, e, f, c: (e, 0, f)),   # b3
                pl.BlockSpec((None, D, TF), lambda i, e, f, c: (e, 0, f)),   # W2  (D,F) block
                pl.BlockSpec((None, 1, D), lambda i, e, f, c: (e, 0, 0)),    # b2
            ],
            out_specs=pl.BlockSpec((TN, D), lambda i, e, f, c: (i, 0)),
        ),
        compiler_params=pltpu.CompilerParams(
            dimension_semantics=("parallel", "arbitrary", "arbitrary"),
            vmem_limit_bytes=vmem_limit),
    )(counts, x_pad, g1, g2, gates_t, w1, b1, w3, b3, w2, b2)

    aux_loss = jnp.float32(0.0)   # eval mode: aux loss only computed when training
    return out_pad[:N].reshape(B, T, D), aux_loss


# ----------------------------------------------------------------------------
# Pure-JAX reference (mirrors the PyTorch forward) for a correctness check.
# ----------------------------------------------------------------------------
def _reference(x, params, *, eps_outer, eps_inner, top_k):
    B, T, D = x.shape
    N = B * T
    E, F, _ = params["w1"].shape
    xf = x.reshape(N, D)

    def rms(v, w, eps):
        return w * (v / jnp.sqrt(jnp.mean(v * v, axis=-1, keepdims=True) + eps))

    h = rms(xf, params["rms_outer_w"], eps_outer)
    h2 = rms(h, params["rms_inner_w"], eps_inner)
    logits = h2 @ params["router_w"].T + params["router_b"]
    probs = jax.nn.softmax(logits, axis=-1)
    top_v, top_i = jax.lax.top_k(probs, top_k)
    top_w = top_v / jnp.sum(top_v, axis=-1, keepdims=True)

    out = jnp.zeros_like(xf)
    for e in range(E):
        gate = jnp.sum(jnp.where(top_i == e, top_w, 0.0), axis=-1, keepdims=True)
        u = h2 @ params["w1"][e].T + params["b1"][e]
        v = h2 @ params["w3"][e].T + params["b3"][e]
        y = (jax.nn.silu(u) * v) @ params["w2"][e].T + params["b2"][e]
        out = out + gate * y
    return (xf + out).reshape(B, T, D)


# ----------------------------------------------------------------------------
# Main
# ----------------------------------------------------------------------------
if __name__ == "__main__":
    B, T, D, F, E, K = 2, 15, 128, 256, 4, 2     # N=30 -> padded to 32, 4 token tiles
    eps_outer, eps_inner = 1e-6, 1e-7

    key = jax.random.PRNGKey(0)
    ks = jax.random.split(key, 10)

    def linear_init(kw, kb, fan_in, shape_w, shape_b):
        bound = 1.0 / (fan_in ** 0.5)
        w = jax.random.uniform(kw, shape_w, jnp.float32, -bound, bound)
        b = jax.random.uniform(kb, shape_b, jnp.float32, -bound, bound)
        return w, b

    w1, b1 = linear_init(ks[0], ks[1], D, (E, F, D), (E, F))   # Linear(d_model, d_ffn)
    w2, b2 = linear_init(ks[2], ks[3], F, (E, D, F), (E, D))   # Linear(d_ffn, d_model)
    w3, b3 = linear_init(ks[4], ks[5], D, (E, F, D), (E, F))   # Linear(d_model, d_ffn)
    wr, br = linear_init(ks[6], ks[7], D, (E, D), (E,))        # router Linear(d_model, E)

    params = dict(
        rms_outer_w=jnp.ones((D,), jnp.float32),
        rms_inner_w=jnp.ones((D,), jnp.float32),
        router_w=wr, router_b=br,
        w1=w1, b1=b1, w2=w2, b2=b2, w3=w3, b3=b3,
    )

    x = jax.random.normal(ks[8], (B, T, D), jnp.float32)
    ref = _reference(x, params, eps_outer=eps_outer, eps_inner=eps_inner, top_k=K)

    # Exact-precision path (f32 MXU) -> strict check against the f32 reference.
    fwd_f32 = jax.jit(functools.partial(
        moe_block_forward, eps_outer=eps_outer, eps_inner=eps_inner, top_k=K,
        block_n=8, block_f=128, compute_dtype=jnp.float32))
    out, aux = fwd_f32(x, params)
    out = jax.block_until_ready(out)
    assert out.shape == (B, T, D)
    assert jnp.allclose(out, ref, rtol=1e-5, atol=1e-5), "f32 mismatch vs reference"
    assert float(aux) == 0.0

    # Production path: bf16 MXU matmuls with f32 accumulate / normalize / softmax.
    fwd_bf16 = jax.jit(functools.partial(
        moe_block_forward, eps_outer=eps_outer, eps_inner=eps_inner, top_k=K,
        block_n=8, block_f=128, compute_dtype=jnp.bfloat16))
    out_bf, _ = fwd_bf16(x, params)
    out_bf = jax.block_until_ready(out_bf)
    assert bool(jnp.all(jnp.isfinite(out_bf)))
    assert jnp.allclose(out_bf, ref, rtol=1e-1, atol=1e-1), "bf16 mismatch vs reference"

    print("KERNEL_OK")
</pallas_src>

<mosaic_0001>
module attributes {stable_mosaic.version = 11 : i64} {
  func.func @_rmsnorm_router_kernel(%arg0: i32, %arg1: memref<8x128xf32, #tpu.memory_space<vmem>>, %arg2: memref<1x128xf32, #tpu.memory_space<vmem>>, %arg3: memref<1x128xf32, #tpu.memory_space<vmem>>, %arg4: memref<128x128xf32, #tpu.memory_space<vmem>>, %arg5: memref<1x128xf32, #tpu.memory_space<vmem>>, %arg6: memref<8x128xf32, #tpu.memory_space<vmem>>) attributes {dimension_semantics = [#tpu.dimension_semantics<parallel>], iteration_bounds = array<i64: 4>, scalar_prefetch = 0 : i64, scratch_operands = 0 : i64, tpu.core_type = #tpu.core_type<tc>, window_params = [{transform_indices = @transform_0, window_bounds = array<i64: 8, 128>}, {pipeline_mode = #tpu.pipeline_mode<synchronous>, transform_indices = @transform_1, window_bounds = array<i64: 1, 128>}, {pipeline_mode = #tpu.pipeline_mode<synchronous>, transform_indices = @transform_2, window_bounds = array<i64: 1, 128>}, {pipeline_mode = #tpu.pipeline_mode<synchronous>, transform_indices = @transform_3, window_bounds = array<i64: 128, 128>}, {pipeline_mode = #tpu.pipeline_mode<synchronous>, transform_indices = @transform_4, window_bounds = array<i64: 1, 128>}, {transform_indices = @transform_5, window_bounds = array<i64: 8, 128>}]} {
    %c0 = arith.constant 0 : index
    %c0_0 = arith.constant 0 : index
    %0 = vector.load %arg1[%c0, %c0_0] : memref<8x128xf32, #tpu.memory_space<vmem>>, vector<8x128xf32>
    %c0_1 = arith.constant 0 : index
    %c0_2 = arith.constant 0 : index
    %1 = vector.load %arg2[%c0_1, %c0_2] : memref<1x128xf32, #tpu.memory_space<vmem>>, vector<1x128xf32>
    %2 = arith.mulf %0, %0 : vector<8x128xf32>
    %cst = arith.constant dense<0.000000e+00> : vector<8xf32>
    %3 = vector.multi_reduction <add>, %2, %cst [1] : vector<8x128xf32> to vector<8xf32>
    %4 = vector.shape_cast %3 : vector<8xf32> to vector<8x1xf32>
    %cst_3 = arith.constant 1.280000e+02 : f32
    %5 = vector.broadcast %cst_3 : f32 to vector<8x1xf32>
    %6 = arith.divf %4, %5 : vector<8x1xf32>
    %cst_4 = arith.constant 9.99999997E-7 : f32
    %7 = vector.broadcast %cst_4 : f32 to vector<8x1xf32>
    %8 = arith.addf %6, %7 : vector<8x1xf32>
    %9 = math.sqrt %8 : vector<8x1xf32>
    %10 = vector.broadcast %9 : vector<8x1xf32> to vector<8x128xf32>
    %11 = arith.divf %0, %10 : vector<8x128xf32>
    %12 = vector.broadcast %1 : vector<1x128xf32> to vector<8x128xf32>
    %13 = arith.mulf %12, %11 : vector<8x128xf32>
    %c0_5 = arith.constant 0 : index
    %c0_6 = arith.constant 0 : index
    %14 = vector.load %arg3[%c0_5, %c0_6] : memref<1x128xf32, #tpu.memory_space<vmem>>, vector<1x128xf32>
    %15 = arith.mulf %13, %13 : vector<8x128xf32>
    %cst_7 = arith.constant dense<0.000000e+00> : vector<8xf32>
    %16 = vector.multi_reduction <add>, %15, %cst_7 [1] : vector<8x128xf32> to vector<8xf32>
    %17 = vector.shape_cast %16 : vector<8xf32> to vector<8x1xf32>
    %cst_8 = arith.constant 1.280000e+02 : f32
    %18 = vector.broadcast %cst_8 : f32 to vector<8x1xf32>
    %19 = arith.divf %17, %18 : vector<8x1xf32>
    %cst_9 = arith.constant 1.000000e-07 : f32
    %20 = vector.broadcast %cst_9 : f32 to vector<8x1xf32>
    %21 = arith.addf %19, %20 : vector<8x1xf32>
    %22 = math.sqrt %21 : vector<8x1xf32>
    %23 = vector.broadcast %22 : vector<8x1xf32> to vector<8x128xf32>
    %24 = arith.divf %13, %23 : vector<8x128xf32>
    %25 = vector.broadcast %14 : vector<1x128xf32> to vector<8x128xf32>
    %26 = arith.mulf %25, %24 : vector<8x128xf32>
    %c0_10 = arith.constant 0 : index
    %c0_11 = arith.constant 0 : index
    %27 = vector.load %arg4[%c0_10, %c0_11] : memref<128x128xf32, #tpu.memory_space<vmem>>, vector<128x128xf32>
    %cst_12 = arith.constant dense<0.000000e+00> : vector<8x128xf32>
    %28 = tpu.matmul %26, %27, %cst_12 {dimension_numbers = #tpu.dot_dimension_numbers<[1], [0], [0], [1], [0, 0, 1, 1], [], []>} : vector<8x128xf32>, vector<128x128xf32>, vector<8x128xf32> -> vector<8x128xf32>
    %c0_13 = arith.constant 0 : index
    %c0_14 = arith.constant 0 : index
    %29 = vector.load %arg5[%c0_13, %c0_14] : memref<1x128xf32, #tpu.memory_space<vmem>>, vector<1x128xf32>
    %30 = vector.broadcast %29 : vector<1x128xf32> to vector<8x128xf32>
    %31 = arith.addf %28, %30 : vector<8x128xf32>
    %c0_15 = arith.constant 0 : index
    %c0_16 = arith.constant 0 : index
    %32 = vector.load %arg6[%c0_15, %c0_16] : memref<8x128xf32, #tpu.memory_space<vmem>>, vector<8x128xf32>
    tpu.vector_store %arg6[%c0_15, %c0_16], %31 {strides = array<i32>} : memref<8x128xf32, #tpu.memory_space<vmem>>, vector<8x128xf32>,
    return
  }
  func.func @transform_0(%arg0: i32) -> (i32, i32) {
    %c0_i32 = arith.constant 0 : i32
    %c0_i32_0 = arith.constant 0 : i32
    return %arg0, %c0_i32 : i32, i32
  }
  func.func @transform_1(%arg0: i32) -> (i32, i32) {
    %c0_i32 = arith.constant 0 : i32
    %c0_i32_0 = arith.constant 0 : i32
    %c0_i32_1 = arith.constant 0 : i32
    return %c0_i32, %c0_i32_0 : i32, i32
  }
  func.func @transform_2(%arg0: i32) -> (i32, i32) {
    %c0_i32 = arith.constant 0 : i32
    %c0_i32_0 = arith.constant 0 : i32
    %c0_i32_1 = arith.constant 0 : i32
    return %c0_i32, %c0_i32_0 : i32, i32
  }
  func.func @transform_3(%arg0: i32) -> (i32, i32) {
    %c0_i32 = arith.constant 0 : i32
    %c0_i32_0 = arith.constant 0 : i32
    %c0_i32_1 = arith.constant 0 : i32
    return %c0_i32, %c0_i32_0 : i32, i32
  }
  func.func @transform_4(%arg0: i32) -> (i32, i32) {
    %c0_i32 = arith.constant 0 : i32
    %c0_i32_0 = arith.constant 0 : i32
    %c0_i32_1 = arith.constant 0 : i32
    return %c0_i32, %c0_i32_0 : i32, i32
  }
  func.func @transform_5(%arg0: i32) -> (i32, i32) {
    %c0_i32 = arith.constant 0 : i32
    %c0_i32_0 = arith.constant 0 : i32
    return %arg0, %c0_i32 : i32, i32
  }
}

module attributes {stable_mosaic.version = 11 : i64} {
  func.func @_moe_expert_kernel(%arg0: i32, %arg1: i32, %arg2: i32, %arg3: memref<16xi32, #tpu.memory_space<smem>>, %arg4: memref<8x128xf32, #tpu.memory_space<vmem>>, %arg5: memref<1x128xf32, #tpu.memory_space<vmem>>, %arg6: memref<1x128xf32, #tpu.memory_space<vmem>>, %arg7: memref<1x8x1xf32, #tpu.memory_space<vmem>>, %arg8: memref<1x128x128xf32, #tpu.memory_space<vmem>>, %arg9: memref<1x1x128xf32, #tpu.memory_space<vmem>>, %arg10: memref<1x128x128xf32, #tpu.memory_space<vmem>>, %arg11: memref<1x1x128xf32, #tpu.memory_space<vmem>>, %arg12: memref<1x128x128xf32, #tpu.memory_space<vmem>>, %arg13: memref<1x1x128xf32, #tpu.memory_space<vmem>>, %arg14: memref<8x128xf32, #tpu.memory_space<vmem>>) attributes {dimension_semantics = [#tpu.dimension_semantics<parallel>, #tpu.dimension_semantics<arbitrary>, #tpu.dimension_semantics<arbitrary>], iteration_bounds = array<i64: 4, 4, 2>, scalar_prefetch = 1 : i64, scratch_operands = 0 : i64, tpu.core_type = #tpu.core_type<tc>, window_params = [{transform_indices = @transform_0, window_bounds = array<i64: 8, 128>}, {pipeline_mode = #tpu.pipeline_mode<synchronous>, transform_indices = @transform_1, window_bounds = array<i64: 1, 128>}, {pipeline_mode = #tpu.pipeline_mode<synchronous>, transform_indices = @transform_2, window_bounds = array<i64: 1, 128>}, {transform_indices = @transform_3, window_bounds = array<i64: 1, 8, 1>}, {transform_indices = @transform_4, window_bounds = array<i64: 1, 128, 128>}, {transform_indices = @transform_5, window_bounds = array<i64: 1, 1, 128>}, {transform_indices = @transform_6, window_bounds = array<i64: 1, 128, 128>}, {transform_indices = @transform_7, window_bounds = array<i64: 1, 1, 128>}, {transform_indices = @transform_8, window_bounds = array<i64: 1, 128, 128>}, {transform_indices = @transform_9, window_bounds = array<i64: 1, 1, 128>}, {transform_indices = @transform_10, window_bounds = array<i64: 8, 128>}]} {
    %c0_i32 = arith.constant 0 : i32
    %0 = arith.cmpi eq, %arg1, %c0_i32 : i32
    %c0_i32_0 = arith.constant 0 : i32
    %1 = arith.cmpi eq, %arg2, %c0_i32_0 : i32
    %2 = arith.andi %0, %1 : i1
    %3 = arith.extui %2 : i1 to i32
    %c0_i32_1 = arith.constant 0 : i32
    %4 = arith.cmpi ne, %3, %c0_i32_1 : i32
    scf.if %4 {
      %c0 = arith.constant 0 : index
      %c0_4 = arith.constant 0 : index
      %12 = vector.load %arg4[%c0, %c0_4] : memref<8x128xf32, #tpu.memory_space<vmem>>, vector<8x128xf32>
      %c0_5 = arith.constant 0 : index
      %c0_6 = arith.constant 0 : index
      %13 = vector.load %arg14[%c0_5, %c0_6] : memref<8x128xf32, #tpu.memory_space<vmem>>, vector<8x128xf32>
      tpu.vector_store %arg14[%c0_5, %c0_6], %12 {strides = array<i32>} : memref<8x128xf32, #tpu.memory_space<vmem>>, vector<8x128xf32>,
    } else {
    }
    %c4_i32 = arith.constant 4 : i32
    %5 = arith.muli %arg0, %c4_i32 : i32
    %6 = arith.addi %5, %arg1 : i32
    %7 = arith.index_cast %6 : i32 to index
    %8 = memref.load %arg3[%7] : memref<16xi32, #tpu.memory_space<smem>>
    %c0_i32_2 = arith.constant 0 : i32
    %9 = arith.cmpi sgt, %8, %c0_i32_2 : i32
    %10 = arith.extui %9 : i1 to i32
    %c0_i32_3 = arith.constant 0 : i32
    %11 = arith.cmpi ne, %10, %c0_i32_3 : i32
    scf.if %11 {
      %c0 = arith.constant 0 : index
      %c0_4 = arith.constant 0 : index
      %12 = vector.load %arg4[%c0, %c0_4] : memref<8x128xf32, #tpu.memory_space<vmem>>, vector<8x128xf32>
      %c0_5 = arith.constant 0 : index
      %c0_6 = arith.constant 0 : index
      %13 = vector.load %arg5[%c0_5, %c0_6] : memref<1x128xf32, #tpu.memory_space<vmem>>, vector<1x128xf32>
      %14 = arith.mulf %12, %12 : vector<8x128xf32>
      %cst = arith.constant dense<0.000000e+00> : vector<8xf32>
      %15 = vector.multi_reduction <add>, %14, %cst [1] : vector<8x128xf32> to vector<8xf32>
      %16 = vector.shape_cast %15 : vector<8xf32> to vector<8x1xf32>
      %cst_7 = arith.constant 1.280000e+02 : f32
      %17 = vector.broadcast %cst_7 : f32 to vector<8x1xf32>
      %18 = arith.divf %16, %17 : vector<8x1xf32>
      %cst_8 = arith.constant 9.99999997E-7 : f32
      %19 = vector.broadcast %cst_8 : f32 to vector<8x1xf32>
      %20 = arith.addf %18, %19 : vector<8x1xf32>
      %21 = math.sqrt %20 : vector<8x1xf32>
      %22 = vector.broadcast %21 : vector<8x1xf32> to vector<8x128xf32>
      %23 = arith.divf %12, %22 : vector<8x128xf32>
      %24 = vector.broadcast %13 : vector<1x128xf32> to vector<8x128xf32>
      %25 = arith.mulf %24, %23 : vector<8x128xf32>
      %c0_9 = arith.constant 0 : index
      %c0_10 = arith.constant 0 : index
      %26 = vector.load %arg6[%c0_9, %c0_10] : memref<1x128xf32, #tpu.memory_space<vmem>>, vector<1x128xf32>
      %27 = arith.mulf %25, %25 : vector<8x128xf32>
      %cst_11 = arith.constant dense<0.000000e+00> : vector<8xf32>
      %28 = vector.multi_reduction <add>, %27, %cst_11 [1] : vector<8x128xf32> to vector<8xf32>
      %29 = vector.shape_cast %28 : vector<8xf32> to vector<8x1xf32>
      %cst_12 = arith.constant 1.280000e+02 : f32
      %30 = vector.broadcast %cst_12 : f32 to vector<8x1xf32>
      %31 = arith.divf %29, %30 : vector<8x1xf32>
      %cst_13 = arith.constant 1.000000e-07 : f32
      %32 = vector.broadcast %cst_13 : f32 to vector<8x1xf32>
      %33 = arith.addf %31, %32 : vector<8x1xf32>
      %34 = math.sqrt %33 : vector<8x1xf32>
      %35 = vector.broadcast %34 : vector<8x1xf32> to vector<8x128xf32>
      %36 = arith.divf %25, %35 : vector<8x128xf32>
      %37 = vector.broadcast %26 : vector<1x128xf32> to vector<8x128xf32>
      %38 = arith.mulf %37, %36 : vector<8x128xf32>
      %c0_14 = arith.constant 0 : index
      %c0_15 = arith.constant 0 : index
      %c0_16 = arith.constant 0 : index
      %39 = vector.load %arg8[%c0_14, %c0_15, %c0_16] : memref<1x128x128xf32, #tpu.memory_space<vmem>>, vector<1x128x128xf32>
      %40 = vector.shape_cast %39 : vector<1x128x128xf32> to vector<128x128xf32>
      %cst_17 = arith.constant dense<0.000000e+00> : vector<8x128xf32>
      %41 = tpu.matmul %38, %40, %cst_17 {dimension_numbers = #tpu.dot_dimension_numbers<[1], [1], [0], [0], [0, 0, 1, 0], [], []>} : vector<8x128xf32>, vector<128x128xf32>, vector<8x128xf32> -> vector<8x128xf32>
      %c0_18 = arith.constant 0 : index
      %c0_19 = arith.constant 0 : index
      %c0_20 = arith.constant 0 : index
      %42 = vector.load %arg9[%c0_18, %c0_19, %c0_20] : memref<1x1x128xf32, #tpu.memory_space<vmem>>, vector<1x1x128xf32>
      %43 = vector.shape_cast %42 : vector<1x1x128xf32> to vector<1x128xf32>
      %44 = vector.broadcast %43 : vector<1x128xf32> to vector<8x128xf32>
      %45 = arith.addf %41, %44 : vector<8x128xf32>
      %c0_21 = arith.constant 0 : index
      %c0_22 = arith.constant 0 : index
      %c0_23 = arith.constant 0 : index
      %46 = vector.load %arg10[%c0_21, %c0_22, %c0_23] : memref<1x128x128xf32, #tpu.memory_space<vmem>>, vector<1x128x128xf32>
      %47 = vector.shape_cast %46 : vector<1x128x128xf32> to vector<128x128xf32>
      %cst_24 = arith.constant dense<0.000000e+00> : vector<8x128xf32>
      %48 = tpu.matmul %38, %47, %cst_24 {dimension_numbers = #tpu.dot_dimension_numbers<[1], [1], [0], [0], [0, 0, 1, 0], [], []>} : vector<8x128xf32>, vector<128x128xf32>, vector<8x128xf32> -> vector<8x128xf32>
      %c0_25 = arith.constant 0 : index
      %c0_26 = arith.constant 0 : index
      %c0_27 = arith.constant 0 : index
      %49 = vector.load %arg11[%c0_25, %c0_26, %c0_27] : memref<1x1x128xf32, #tpu.memory_space<vmem>>, vector<1x1x128xf32>
      %50 = vector.shape_cast %49 : vector<1x1x128xf32> to vector<1x128xf32>
      %51 = vector.broadcast %50 : vector<1x128xf32> to vector<8x128xf32>
      %52 = arith.addf %48, %51 : vector<8x128xf32>
      %53 = arith.negf %45 : vector<8x128xf32>
      %54 = math.exp %53 : vector<8x128xf32>
      %cst_28 = arith.constant 1.000000e+00 : f32
      %55 = vector.broadcast %cst_28 : f32 to vector<8x128xf32>
      %56 = arith.addf %55, %54 : vector<8x128xf32>
      %57 = arith.divf %55, %56 : vector<8x128xf32>
      %58 = arith.mulf %45, %57 : vector<8x128xf32>
      %59 = arith.mulf %58, %52 : vector<8x128xf32>
      %c0_29 = arith.constant 0 : index
      %c0_30 = arith.constant 0 : index
      %c0_31 = arith.constant 0 : index
      %60 = vector.load %arg12[%c0_29, %c0_30, %c0_31] : memref<1x128x128xf32, #tpu.memory_space<vmem>>, vector<1x128x128xf32>
      %61 = vector.shape_cast %60 : vector<1x128x128xf32> to vector<128x128xf32>
      %cst_32 = arith.constant dense<0.000000e+00> : vector<8x128xf32>
      %62 = tpu.matmul %59, %61, %cst_32 {dimension_numbers = #tpu.dot_dimension_numbers<[1], [1], [0], [0], [0, 0, 1, 0], [], []>} : vector<8x128xf32>, vector<128x128xf32>, vector<8x128xf32> -> vector<8x128xf32>
      %c0_33 = arith.constant 0 : index
      %c0_34 = arith.constant 0 : index
      %c0_35 = arith.constant 0 : index
      %63 = vector.load %arg13[%c0_33, %c0_34, %c0_35] : memref<1x1x128xf32, #tpu.memory_space<vmem>>, vector<1x1x128xf32>
      %64 = vector.shape_cast %63 : vector<1x1x128xf32> to vector<1x128xf32>
      %c0_i32_36 = arith.constant 0 : i32
      %65 = arith.cmpi eq, %arg2, %c0_i32_36 : i32
      %66 = arith.extui %65 : i1 to i32
      %67 = arith.sitofp %66 : i32 to f32
      %68 = vector.broadcast %67 : f32 to vector<1x128xf32>
      %69 = arith.mulf %64, %68 : vector<1x128xf32>
      %70 = vector.broadcast %69 : vector<1x128xf32> to vector<8x128xf32>
      %71 = arith.addf %62, %70 : vector<8x128xf32>
      %c0_37 = arith.constant 0 : index
      %c0_38 = arith.constant 0 : index
      %72 = vector.load %arg14[%c0_37, %c0_38] : memref<8x128xf32, #tpu.memory_space<vmem>>, vector<8x128xf32>
      %c0_39 = arith.constant 0 : index
      %c0_40 = arith.constant 0 : index
      %c0_41 = arith.constant 0 : index
      %73 = vector.load %arg7[%c0_39, %c0_40, %c0_41] : memref<1x8x1xf32, #tpu.memory_space<vmem>>, vector<1x8x1xf32>
      %74 = vector.shape_cast %73 : vector<1x8x1xf32> to vector<8x1xf32>
      %75 = vector.broadcast %74 : vector<8x1xf32> to vector<8x128xf32>
      %76 = arith.mulf %75, %71 : vector<8x128xf32>
      %77 = arith.addf %72, %76 : vector<8x128xf32>
      %c0_42 = arith.constant 0 : index
      %c0_43 = arith.constant 0 : index
      %78 = vector.load %arg14[%c0_42, %c0_43] : memref<8x128xf32, #tpu.memory_space<vmem>>, vector<8x128xf32>
      tpu.vector_store %arg14[%c0_42, %c0_43], %77 {strides = array<i32>} : memref<8x128xf32, #tpu.memory_space<vmem>>, vector<8x128xf32>,
    } else {
    }
    return
  }
  func.func @transform_0(%arg0: i32, %arg1: i32, %arg2: i32, %arg3: memref<16xi32, #tpu.memory_space<smem>>) -> (i32, i32) {
    %c0_i32 = arith.constant 0 : i32
    %c0_i32_0 = arith.constant 0 : i32
    return %arg0, %c0_i32 : i32, i32
  }
  func.func @transform_1(%arg0: i32, %arg1: i32, %arg2: i32, %arg3: memref<16xi32, #tpu.memory_space<smem>>) -> (i32, i32) {
    %c0_i32 = arith.constant 0 : i32
    %c0_i32_0 = arith.constant 0 : i32
    %c0_i32_1 = arith.constant 0 : i32
    return %c0_i32, %c0_i32_0 : i32, i32
  }
  func.func @transform_2(%arg0: i32, %arg1: i32, %arg2: i32, %arg3: memref<16xi32, #tpu.memory_space<smem>>) -> (i32, i32) {
    %c0_i32 = arith.constant 0 : i32
    %c0_i32_0 = arith.constant 0 : i32
    %c0_i32_1 = arith.constant 0 : i32
    return %c0_i32, %c0_i32_0 : i32, i32
  }
  func.func @transform_3(%arg0: i32, %arg1: i32, %arg2: i32, %arg3: memref<16xi32, #tpu.memory_space<smem>>) -> (i32, i32, i32) {
    %c0_i32 = arith.constant 0 : i32
    %c0_i32_0 = arith.constant 0 : i32
    return %arg1, %arg0, %c0_i32 : i32, i32, i32
  }
  func.func @transform_4(%arg0: i32, %arg1: i32, %arg2: i32, %arg3: memref<16xi32, #tpu.memory_space<smem>>) -> (i32, i32, i32) {
    %c0_i32 = arith.constant 0 : i32
    %c0_i32_0 = arith.constant 0 : i32
    return %arg1, %arg2, %c0_i32 : i32, i32, i32
  }
  func.func @transform_5(%arg0: i32, %arg1: i32, %arg2: i32, %arg3: memref<16xi32, #tpu.memory_space<smem>>) -> (i32, i32, i32) {
    %c0_i32 = arith.constant 0 : i32
    %c0_i32_0 = arith.constant 0 : i32
    return %arg1, %c0_i32, %arg2 : i32, i32, i32
  }
  func.func @transform_6(%arg0: i32, %arg1: i32, %arg2: i32, %arg3: memref<16xi32, #tpu.memory_space<smem>>) -> (i32, i32, i32) {
    %c0_i32 = arith.constant 0 : i32
    %c0_i32_0 = arith.constant 0 : i32
    return %arg1, %arg2, %c0_i32 : i32, i32, i32
  }
  func.func @transform_7(%arg0: i32, %arg1: i32, %arg2: i32, %arg3: memref<16xi32, #tpu.memory_space<smem>>) -> (i32, i32, i32) {
    %c0_i32 = arith.constant 0 : i32
    %c0_i32_0 = arith.constant 0 : i32
    return %arg1, %c0_i32, %arg2 : i32, i32, i32
  }
  func.func @transform_8(%arg0: i32, %arg1: i32, %arg2: i32, %arg3: memref<16xi32, #tpu.memory_space<smem>>) -> (i32, i32, i32) {
    %c0_i32 = arith.constant 0 : i32
    %c0_i32_0 = arith.constant 0 : i32
    return %arg1, %c0_i32, %arg2 : i32, i32, i32
  }
  func.func @transform_9(%arg0: i32, %arg1: i32, %arg2: i32, %arg3: memref<16xi32, #tpu.memory_space<smem>>) -> (i32, i32, i32) {
    %c0_i32 = arith.constant 0 : i32
    %c0_i32_0 = arith.constant 0 : i32
    %c0_i32_1 = arith.constant 0 : i32
    return %arg1, %c0_i32, %c0_i32_0 : i32, i32, i32
  }
  func.func @transform_10(%arg0: i32, %arg1: i32, %arg2: i32, %arg3: memref<16xi32, #tpu.memory_space<smem>>) -> (i32, i32) {
    %c0_i32 = arith.constant 0 : i32
    %c0_i32_0 = arith.constant 0 : i32
    return %arg0, %c0_i32 : i32, i32
  }
}

</mosaic_0001>

<bundles_post_ra>
// kernel: moe_block_forward.2
= control target key start
LH: loop header
LB: loop body
LE: loop exit
PB: predicated region body
PF: predicated region fallthrough
CT: control target
= control target key end

     0   :  { %s561_s18 = smov 0   ;;  %s642_s0 = inlined_call_operand.vmem [shape: f32[32,128], index: 0, kind: input, shape index: {}]   ;;  %s643_s1 = inlined_call_operand.vmem [shape: f32[1,128], index: 1, kind: input, shape index: {}]   ;;  %s644_s2 = inlined_call_operand.vmem [shape: f32[1,128], index: 2, kind: input, shape index: {}]   ;;  %s645_s3 = inlined_call_operand.vmem [shape: f32[128,128], index: 3, kind: input, shape index: {}]   ;;  %s646_s4 = inlined_call_operand.vmem [shape: f32[1,128], index: 4, kind: input, shape index: {}]   ;;  %s647_s5 = inlined_call_operand.vmem [shape: f32[32,128], index: 5, kind: output, shape index: {}]  }
   0x1 LB: > { %s413_s19 = sadd.s32 4294967295, %s526_s18   ;;  %p417_p0 = scmp.ge.s32.totalorder %s526_s18, 1  ;;  %s526_s18 = sphi %s561_s18, %s15_s18  }
   0x2   : > { %p186_p1 = scmp.lt.s32.totalorder %s526_s18, 5 }
   0x4   : > { %p187_p2 = pnand %p417_p0, %p186_p1 }
   0x5   : > { %p212_p3 = scmp.lt.s32.totalorder (!%p187_p2), %s413_s19, 3  ;;  %v420_v11 = vld [vmem:[%s643_s1] ss:$0 sm:$0xff] (!%p187_p2)  ;;  %v267_v16 = vld [vmem:[%s645_s3 + $0x8] sm:$0xff] (!%p187_p2)  ;;  %v528_v18 = vmov (!%p187_p2), 0.0|0.0   ;;  %v268_v19 = vld [vmem:[%s645_s3 + $0x10] sm:$0xff] (!%p187_p2) }
   0x6   : > { %190 = sbr.rel (%p187_p2) target bundleno = 588 (0x24c), region = 40  ;;  %v266_v15 = vld [vmem:[%s645_s3] sm:$0xff] (!%p187_p2)  ;;  %477 = vmatprep.subr.bf16.mxu0 (!%p187_p2), %v528_v18  ;;  %v269_v20 = vld [vmem:[%s645_s3 + $0x18] sm:$0xff] (!%p187_p2)  ;;  %v271_v23 = vld [vmem:[%s645_s3 + $0x28] sm:$0xff] (!%p187_p2)  ;;  %vm529_vm2 = vmmov (!%p187_p2), 0   ;;  %v530_v33 = vmov (!%p187_p2), 0.0  }
   0x7   : > { %v478_v17 = vpack.c.bf16 (!%p187_p2), %v267_v16, %v266_v15  ;;  %v481_v21 = vpack.c.bf16 (!%p187_p2), %v269_v20, %v268_v19  ;;  %v270_v22 = vld [vmem:[%s645_s3 + $0x20] sm:$0xff] (!%p187_p2)  ;;  %v272_v25 = vld [vmem:[%s645_s3 + $0x30] sm:$0xff] (!%p187_p2)  ;;  %v273_v26 = vld [vmem:[%s645_s3 + $0x38] sm:$0xff] (!%p187_p2)  ;;  %474 = vmatprep.mubr.msk.f32.mxu0 (!%p187_p2), %vm529_vm2, %v530_v33 }
   0x8   : > { %v484_v24 = vpack.c.bf16 (!%p187_p2), %v271_v23, %v270_v22  ;;  %v487_v27 = vpack.c.bf16 (!%p187_p2), %v273_v26, %v272_v25  ;;  %v274_v28 = vld [vmem:[%s645_s3 + $0x40] sm:$0xff] (!%p187_p2)  ;;  %v275_v29 = vld [vmem:[%s645_s3 + $0x48] sm:$0xff] (!%p187_p2)  ;;  %v276_v31 = vld [vmem:[%s645_s3 + $0x50] sm:$0xff] (!%p187_p2) }
   0x9   : > { %479 = vmatpush3.bf16.msra.mxu0 (!%p187_p2), %v478_v17  ;;  %v490_v30 = vpack.c.bf16 (!%p187_p2), %v275_v29, %v274_v28  ;;  %v277_v32 = vld [vmem:[%s645_s3 + $0x58] sm:$0xff] (!%p187_p2)  ;;  %v278_v35 = vld [vmem:[%s645_s3 + $0x60] sm:$0xff] (!%p187_p2)  ;;  %v279_v36 = vld [vmem:[%s645_s3 + $0x68] sm:$0xff] (!%p187_p2) }
   0xa   : > { %480 = vmatprep.subr.bf16.mxu0 (!%p187_p2), %v528_v18  ;;  %v493_v34 = vpack.c.bf16 (!%p187_p2), %v277_v32, %v276_v31  ;;  %v496_v37 = vpack.c.bf16 (!%p187_p2), %v279_v36, %v278_v35  ;;  %v280_v38 = vld [vmem:[%s645_s3 + $0x70] sm:$0xff] (!%p187_p2)  ;;  %v281_v39 = vld [vmem:[%s645_s3 + $0x78] sm:$0xff] (!%p187_p2)  ;;  %v421_v50 = vld [vmem:[%s644_s2] ss:$0 sm:$0xff] (!%p187_p2) }
   0xb   : > { %v499_v40 = vpack.c.bf16 (!%p187_p2), %v281_v39, %v280_v38  ;;  %v422_v53 = vld [vmem:[%s646_s4] ss:$0 sm:$0xff] (!%p187_p2) }
   0xd   : > { %s649_s19 = smov (!%p212_p3, %s413_s19), 3  ;;  %482 = vmatpush3.bf16.msra.mxu0 %v481_v21 }
   0xe   : > { %s418_s20 = sshll.u32 %s649_s19, 3  ;;  %483 = vmatprep.subr.bf16.mxu0 %v528_v18 }
   0xf   : > { %s215_s23 = scalar_lea.vmem %s642_s0, %s418_s20  ;;  %s219_s17 = scalar_lea.vmem %s647_s5, %s418_s20 }
  0x10   : > { %v220_v0 = vld [vmem:[%s215_s23] sm:$0xff] }
  0x11   : > { %v222_v1 = vmul.f32 %v220_v0, %v220_v0  ;;  %485 = vmatpush3.bf16.msra.mxu0 %v484_v24 }
  0x12   : > { %486 = vmatprep.subr.bf16.mxu0 %v528_v18 }
  0x13   : > { %223 = vadd.xlane.f32.xlu0 %v222_v1 }
  0x15   : > { %488 = vmatpush3.bf16.msra.mxu0 %v487_v27 }
  0x16   : > { %489 = vmatprep.subr.bf16.mxu0 %v528_v18 }
  0x19   : > { %491 = vmatpush3.bf16.msra.mxu0 %v490_v30 }
  0x1a   : > { %492 = vmatprep.subr.bf16.mxu0 %v528_v18 }
  0x1d   : > { %494 = vmatpush3.bf16.msra.mxu0 %v493_v34 }
  0x1e   : > { %495 = vmatprep.subr.bf16.mxu0 %v528_v18 }
  0x21   : > { %497 = vmatpush3.bf16.msra.mxu0 %v496_v37 }
  0x22   : > { %498 = vmatprep.subr.bf16.mxu0 %v528_v18 }
  0x25   : > { %500 = vmatpush3.bf16.msra.mxu0 %v499_v40 }
  0xa0   : > { %v224_v2 = vpop.xlane.xlu0 %223 }
  0xa1   : > { %v226_v3 = vmul.f32 0.0078125, %v224_v2 }
  0xa3   : > { %v227_v4 = vadd.f32 1e-06, %v226_v3 }
  0xa5   : > { %512 = vrsqrt.f32 %v227_v4  ;;  %vm230_vm0 = vcmp.eq.f32.partialorder %v227_v4, inf  ;;  %v233_v7 = vand.u32 2147483648, %v227_v4  ;;  %vm232_vm1 = vcmp.eq.f32.partialorder %v227_v4, 0.0 }
  0xaf   : > { %v513_v5 = vpop.eup %512 }
  0xb0   : > { %v229_v6 = vmul.f32 %v513_v5, %v227_v4 }
  0xb2   : > { %v231_v8 = vsel %vm230_vm0, %v227_v4, %v229_v6 }
  0xb3   : > { %v234_v9 = vsel %vm232_vm1, %v233_v7, %v231_v8 }
  0xb4   : > { %514 = vrcp.f32 %v234_v9 }
  0xbe   : > { %v515_v10 = vpop.eup %514 }
  0xbf   : > { %v236_v12 = vmul.f32 %v515_v10, %v220_v0 }
  0xc1   : > { %v243_v13 = vmul.f32 %v420_v11, %v236_v12 }
  0xc3   : > { %v245_v14 = vmul.f32 %v243_v13, %v243_v13 }
  0xc5   : > { %246 = vadd.xlane.f32.xlu0 %v245_v14 }
 0x152   : > { %v247_v41 = vpop.xlane.xlu0 %246 }
 0x153   : > { %v248_v42 = vmul.f32 0.0078125, %v247_v41 }
 0x155   : > { %v249_v43 = vadd.f32 1e-07, %v248_v42 }
 0x157   : > { %516 = vrsqrt.f32 %v249_v43  ;;  %vm252_vm3 = vcmp.eq.f32.partialorder %v249_v43, inf  ;;  %v255_v46 = vand.u32 2147483648, %v249_v43  ;;  %vm254_vm4 = vcmp.eq.f32.partialorder %v249_v43, 0.0 }
 0x161   : > { %v517_v44 = vpop.eup %516 }
 0x162   : > { %v251_v45 = vmul.f32 %v517_v44, %v249_v43 }
 0x164   : > { %v253_v47 = vsel %vm252_vm3, %v249_v43, %v251_v45 }
 0x165   : > { %v256_v48 = vsel %vm254_vm4, %v255_v46, %v253_v47 }
 0x166   : > { %518 = vrcp.f32 %v256_v48 }
 0x170   : > { %v519_v49 = vpop.eup %518 }
 0x171   : > { %v258_v51 = vmul.f32 %v519_v49, %v243_v13 }
 0x173   : > { %v265_v52 = vmul.f32 %v421_v50, %v258_v51 }
 0x175   : > { %475 = vmatmul.mubr.f32.vlgmr.msra.gmra.mrb[0].mxu0 %v265_v52 }
 0x248   : > { %v355_v54 = vpop.f32.mrb[0].mxu0 }
 0x249   : > { %v356_v55 = vadd.f32 %v422_v53, %v355_v54  ;;  %v476_v56 = vpop.f32.mrb[1].mxu0 }
 0x24b   : > { %359 = vst [vmem:[%s219_s17] sm:$0xff] %v356_v55 }
 0x24c PF: > { %s15_s18 = sadd.s32 1, %s526_s18  }
 0x24d   : > { %p12_p4 = scmp.ge.s32.totalorder %s15_s18, 6  }
 0x24f   :  { %14 = sbr.rel (!%p12_p4) target bundleno = 1 (0x1), region = 70 }

// kernel: moe_block_forward.3
= control target key start
LH: loop header
LB: loop body
LE: loop exit
PB: predicated region body
PF: predicated region fallthrough
CT: control target
= control target key end

     0   :  { %s2157_s0 = inlined_call_operand.vmem [shape: s32[16], index: 0, kind: input, shape index: {}]   ;;  %s2158_s1 = inlined_call_operand.vmem [shape: f32[32,128], index: 1, kind: input, shape index: {}]   ;;  %s2159_s2 = inlined_call_operand.vmem [shape: f32[1,128], index: 2, kind: input, shape index: {}]   ;;  %s2160_s3 = inlined_call_operand.vmem [shape: f32[1,128], index: 3, kind: input, shape index: {}]   ;;  %s2161_s4 = inlined_call_operand.vmem [shape: f32[4,32,1], index: 4, kind: input, shape index: {}]   ;;  %s2162_s5 = inlined_call_operand.vmem [shape: f32[4,256,128], index: 5, kind: input, shape index: {}]   ;;  %s2163_s6 = inlined_call_operand.vmem [shape: f32[4,1,256], index: 6, kind: input, shape index: {}]   ;;  %s2164_s7 = inlined_call_operand.hbm [shape: f32[4,256,128], index: 7, kind: input, shape index: {}]   ;;  %s2165_s8 = inlined_call_operand.vmem [shape: f32[4,1,256], index: 8, kind: input, shape index: {}]   ;;  %s2166_s9 = inlined_call_operand.hbm [shape: f32[4,128,256], index: 9, kind: input, shape index: {}]   ;;  %s2167_s10 = inlined_call_operand.vmem [shape: f32[4,1,128], index: 10, kind: input, shape index: {}]   ;;  %s2168_s11 = inlined_call_operand.vmem [shape: f32[32,128], index: 11, kind: output, shape index: {}]  }
   0x1   :  { %2179 = sst [smem:[#allocation21_spill]] %s2158_s1  ;;  %s16_s19 = sshll.u32 %s2157_s0, 4  ;;  %s17_s19 = int_to_ptr.vmem [resolvable:$true] %s16_s19 }
   0x2   :  { %2180 = sst [smem:[#allocation22_spill]] %s2159_s2  ;;  %s1539_s20 = scalar_lea.vmem %s17_s19, 16 }
   0x3   :  { %2181 = sst [smem:[#allocation23_spill]] %s2160_s3  ;;  %p1540_p0 = scmp.ne.s32.totalorder %s17_s19, %s1539_s20 }
   0x4   :  { %2182 = sst [smem:[#allocation24_spill]] %s2164_s7  ;;  %p1544_p1 = scmp.lt.s32.totalorder %s17_s19, %s17_s19 }
   0x5   :  { %2183 = sst [smem:[#allocation25_spill]] %s2165_s8  ;;  %p1545_p2 = scmp.lt.s32.totalorder %s1539_s20, %s1539_s20 }
   0x6   :  { %2184 = sst [smem:[#allocation26_spill]] %s2166_s9 }
   0x7   :  { %p1546_p3 = por %p1545_p2, %p1544_p1 }
   0x9   :  { %p1547_p4 = pnand %p1546_p3, %p1540_p0 }
   0xb   :  { %1550 = shalt.err (!%p1547_p4)  }
   0xc   :  { %s1701_s21 = smov [#allocation3]  }
   0xd   :  { %19 = dma.vmem_to_smem %s17_s19, 16, %s1701_s21, [#allocation2] }
   0xe   :  { %1651 = dma.done.wait [#allocation2], 16 }
   0xf   :  { %1652 = vsyncadd [#allocation2], 4294967280 }
  0x10   :  { %21 = sfence }
  0x11   :  { %22 = vsyncpa [#allocation5], 0 }
  0x12   :  { %24 = vsyncpa [#allocation5 + $0x1], 0 }
  0x13   :  { %25 = vsyncpa [#allocation7], 0 }
  0x14   :  { %27 = vsyncpa [#allocation7 + $0x1], 0  ;;  %s1774_s22 = smov 0   ;;  %s1776_s0 = smov 0  }
  0x15   :  { %s1778_s23 = smov 0   ;;  %s1780_s24 = smov 0  }
  0x16   :  { %s1782_s25 = smov 0   ;;  %s1784_s26 = smov 0  }
  0x17   :  { %s1786_s27 = smov 0   ;;  %s1788_s28 = smov 0  }
  0x18   :  { %s1790_s29 = smov 0   ;;  %s1792_s30 = smov 0  }
  0x19 LB: > { %2185 = sst [smem:[#allocation11_spill]] %s1667_s0  ;;  %s1165_s12 = sadd.s32 4294967295, %s1699_s30   ;;  %s1699_s30 = sphi %s1792_s30, %s33_s30   ;;  %s1695_s29 = sphi %s1790_s29, %s2218_s29   ;;  %s1691_s28 = sphi %s1788_s28, %s2217_s28   ;;  %s1687_s27 = sphi %s1786_s27, %s2216_s27   ;;  %s1683_s26 = sphi %s1784_s26, %s2215_s26   ;;  %s1679_s25 = sphi %s1782_s25, %s2214_s25   ;;  %s1675_s24 = sphi %s1780_s24, %s2213_s24   ;;  %s1671_s23 = sphi %s1778_s23, %s2212_s23   ;;  %s1667_s0 = sphi %s1776_s0, %s2211_s0   ;;  %s1663_s22 = sphi %s1774_s22, %s2210_s22  }
  0x1a   : > { %2186 = sst [smem:[#allocation12_spill]] %s1671_s23  ;;  %s45_s13 = sadd.s32 1, %s1687_s27 }
  0x1b   : > { %2187 = sst [smem:[#allocation13_spill]] %s1687_s27  ;;  %p46_p5 = scmp.ge.s32.totalorder %s45_s13, 2 }
  0x1c   : > { %2188 = sst [smem:[#allocation14_spill]] %s1691_s28  ;;  %s48_s14 = sadd.s32 1, %s1691_s28 }
  0x1d   : > { %2189 = sst [smem:[#allocation15_spill]] %s1695_s29  ;;  %s52_s15 = sadd.s32 1, %s1695_s29 }
  0x1e   : > { %2190 = sst [smem:[#allocation16_spill]] %s1699_s30  ;;  %s213_s16 = sadd.s32 1, %s1671_s23 }
  0x1f   : > { %s2220_s13 = smov (%p46_p5, %s45_s13), 0  ;;  %s2222_s14 = smov (!%p46_p5, %s48_s14), %s1691_s28 }
  0x20   : > { %2191 = sst [smem:[#allocation17_spill]] %s2220_s13  ;;  %s209_s17 = ssub.s32 %s1687_s27, %s2220_s13 }
  0x21   : > { %p220_p6 = scmp.ne.s32.totalorder %s1671_s23, %s1667_s0  ;;  %p50_p7 = scmp.ge.s32.totalorder %s2222_s14, 4 }
  0x22   : > { %p221_p8 = scmp.eq.s32.totalorder %s1699_s30, 0  ;;  %p226_p9 = scmp.ne.s32.totalorder %s1667_s0, %s1663_s22 }
  0x23   : > { %p227_p10 = scmp.eq.s32.totalorder %s1165_s12, 0  ;;  %s2224_s14 = smov (%p50_p7, %s2222_s14), 0 }
  0x24   : > { %2192 = sst [smem:[#allocation18_spill]] %s2224_s14  ;;  %s2226_s15 = smov (!%p50_p7, %s52_s15), %s1695_s29 }
  0x25   : > { %s208_s18 = ssub.s32 %s1691_s28, %s2224_s14  ;;  %p1844_p11 = por %p221_p8, %p220_p6 }
  0x26   : > { %p54_p12 = scmp.ge.s32.totalorder %s2226_s15, 4  ;;  %s210_s20 = sor.u32 %s209_s17, %s208_s18 }
  0x27   : > { %p211_p13 = scmp.eq.s32.totalorder %s210_s20, 0  ;;  %p1848_p0 = por %p227_p10, %p226_p9 }
  0x28   : > { %s2228_s15 = smov (%p54_p12, %s2226_s15), 0  ;;  %p1436_p1 = scmp.lt.s32.totalorder %s1699_s30, 32 }
  0x29   : > { %s2194_s21 = scalar_select %p1848_p0, 1, 0 }
  0x2a   : > { %2195 = sst [smem:[#allocation19_spill]] %s2228_s15  ;;  %s1859_s12 = sand.u32 1, %s1671_s23  }
  0x2b   : > { %s1855_s22 = scalar_select %p211_p13, %s1671_s23, %s213_s16  }
  0x2c   : > { %s1170_s14 = sshll.u32 %s1687_s27, 4  ;;  %s2173_s13 = sshll.u32 %s1859_s12, 7 }
  0x2d   : > { %2196 = sst [smem:[#allocation20_spill]] %s1855_s22  ;;  %s1171_s29 = sshll.u32 %s1691_s28, 5 }
  0x2e   : > { %s415_s17 = sadd.s32 %s1171_s29, %s1170_s14  ;;  %s409_s18 = scalar_lea.vmem [#allocation4], %s2173_s13 }
  0x2f   : > { %s418_s20 = sshll.u32 %s409_s18, 4  ;;  %s1172_s3 = sshll.u32 %s415_s17, 7  ;;  %s1868_s20 = int_to_ptr.vmem [resolvable:$true] %s418_s20 }
  0x30   : > { %s2197_s7 = sld [smem:[#allocation24_spill]]  ;;  %p1877_p2 = pnand %p1436_p1, %p1844_p11 }
  0x31   : > { %s406_s14 = scalar_lea.sflag [#allocation5], %s1859_s12 }
  0x32   : > { %p1553_p4 = pneg %p1877_p2 }
  0x36   : > { %s1873_s22 = scalar_lea.hbm %s2197_s7, %s1172_s3  ;;  %s1556_s19 = scalar_lea.hbm %s2197_s7, 16384 }
  0x37   : > { %s1551_s17 = scalar_lea.hbm %s1873_s22, 2048  ;;  %p1557_p7 = scmp.lt.u32.totalorder %s1873_s22, %s2197_s7 }
  0x38   : > { %p1552_p3 = scmp.ne.s32.totalorder %s1873_s22, %s1551_s17  ;;  %p1558_p8 = scmp.lt.u32.totalorder %s1556_s19, %s1551_s17 }
  0x39   : > { %p1560_p10 = scmp.lt.u32.totalorder %s1551_s17, %s1873_s22 }
  0x3a   : > { %p1554_p5 = pnand %p1553_p4, %p1552_p3  ;;  %p1559_p9 = por %p1558_p8, %p1557_p7 }
  0x3c   : > { %p1555_p6 = pneg %p1554_p5  ;;  %p1561_p11 = por %p1560_p10, %p1559_p9 }
  0x3e   : > { %p1562_p12 = pnand %p1561_p11, %p1555_p6 }
  0x40   : > { %1565 = shalt.err (!%p1562_p12)
}
  0x41   : > { %s1566_s13 = scalar_lea.vmem %s1868_s20, 2048  ;;  %s1702_s3 = smov [#allocation4]  }
  0x42   : > { %p1567_p13 = scmp.ne.s32.totalorder %s1868_s20, %s1566_s13  ;;  %s1571_s15 = sshll.u32 %s1702_s3, 4  ;;  %s1572_s15 = int_to_ptr.vmem [resolvable:$false] %s1571_s15 }
  0x43   : > { %s1573_s18 = scalar_lea.vmem %s1572_s15, 4096  ;;  %p1574_p5 = scmp.lt.s32.totalorder %s1868_s20, %s1572_s15 }
  0x44   : > { %p1569_p1 = pnand %p1567_p13, %p1553_p4  ;;  %p1575_p7 = scmp.lt.s32.totalorder %s1573_s18, %s1566_s13 }
  0x46   : > { %p1570_p3 = pneg %p1569_p1  ;;  %p1576_p8 = por %p1575_p7, %p1574_p5 }
  0x48   : > { %p1577_p9 = pnand %p1576_p8, %p1570_p3 }
  0x4a   : > { %1580 = shalt.err (!%p1577_p9)
}
  0x4b   : > { %s1703_s17 = smov 128   ;;  %s1704_s19 = smov 8  }
  0x4c   : > { %1432 = dma.hbm_to_vmem [thread:$0]  (!%p1877_p2), %s1873_s22, 2048, %s1868_s20, %s406_s14, %s1703_s17, %s1703_s17, %s1704_s19  }
  0x4d   : > { %s447_s13 = sadd.s32 %s1687_s27, %s1171_s29  ;;  %s2199_s16 = sshll.u32 %s1859_s12, 7 }
  0x4e   : > { %s442_s3 = scalar_lea.vmem [#allocation6], %s2199_s16  ;;  %s1175_s18 = sshll.u32 %s447_s13, 7 }
  0x4f   : > { %s450_s15 = sshll.u32 %s442_s3, 4  ;;  %s2200_s9 = sld [smem:[#allocation26_spill]]  ;;  %s1917_s15 = int_to_ptr.vmem [resolvable:$true] %s450_s15 }
  0x50   : > { %p1176_p6 = scmp.ge.s32.totalorder %s1699_s30, 1  ;;  %p464_p10 = scmp.lt.s32.totalorder %s1699_s30, 33 }
  0x51   : > { %s439_s29 = scalar_lea.sflag [#allocation7], %s1859_s12 }
  0x52   : > { %p1926_p11 = pnand %p1176_p6, %p464_p10 }
  0x55   : > { %s1922_s8 = scalar_lea.hbm %s2200_s9, %s1175_s18  ;;  %s1586_s14 = scalar_lea.hbm %s2200_s9, 16384 }
  0x56   : > { %s1581_s20 = scalar_lea.hbm %s1922_s8, 2048  ;;  %p1587_p3 = scmp.lt.u32.totalorder %s1922_s8, %s2200_s9 }
  0x57   : > { %p1582_p12 = scmp.ne.s32.totalorder %s1922_s8, %s1581_s20  ;;  %p1588_p5 = scmp.lt.u32.totalorder %s1586_s14, %s1581_s20 }
  0x58   : > { %p1590_p8 = scmp.lt.u32.totalorder %s1581_s20, %s1922_s8 }
  0x59   : > { %p1584_p13 = pnand %p1582_p12, %p1553_p4  ;;  %p1589_p7 = por %p1588_p5, %p1587_p3 }
  0x5b   : > { %p1585_p1 = pneg %p1584_p13  ;;  %p1591_p9 = por %p1590_p8, %p1589_p7 }
  0x5d   : > { %p1592_p6 = pnand %p1591_p9, %p1585_p1 }
  0x5f   : > { %1595 = shalt.err (!%p1592_p6)
}
  0x60   : > { %s1596_s3 = scalar_lea.vmem %s1917_s15, 2048  ;;  %s1705_s18 = smov [#allocation6]  }
  0x61   : > { %p1597_p10 = scmp.ne.s32.totalorder %s1917_s15, %s1596_s3  ;;  %s1601_s2 = sshll.u32 %s1705_s18, 4  ;;  %s1602_s2 = int_to_ptr.vmem [resolvable:$false] %s1601_s2 }
  0x62   : > { %s1603_s7 = scalar_lea.vmem %s1602_s2, 4096  ;;  %p1604_p0 = scmp.lt.s32.totalorder %s1917_s15, %s1602_s2 }
  0x63   : > { %p1599_p12 = pnand %p1597_p10, %p1553_p4  ;;  %p1605_p3 = scmp.lt.s32.totalorder %s1603_s7, %s1596_s3 }
  0x65   : > { %p1600_p13 = pneg %p1599_p12  ;;  %p1606_p5 = por %p1605_p3, %p1604_p0 }
  0x67   : > { %p1607_p7 = pnand %p1606_p5, %p1600_p13 }
  0x69   : > { %1610 = shalt.err (!%p1607_p7)
}
  0x6a   : > { %s1706_s20 = smov 256   ;;  %468 = sbr.rel (%p1926_p11) target bundleno = 970 (0x3ca), region = 60 }
  0x6b   : > { %1435 = dma.hbm_to_vmem [thread:$0]  (!%p1877_p2), %s1922_s8, 2048, %s1917_s15, %s439_s29, %s1706_s20, %s1703_s17, %s1704_s19  }
  0x6c   : > { %s470_s14 = sand.u32 (!%p1926_p11), 1, %s1667_s0   ;;  %p2202_p0 = scmp.ne.s32.totalorder (!%p1926_p11), %s2194_s21, 0 }
  0x6d   : > { %s1177_s13 = sshll.u32 (!%p1926_p11), %s470_s14, 7  ;;  %s471_s16 = scalar_lea.sflag (!%p1926_p11), [#allocation5], %s470_s14 }
  0x6e   : > { %s1961_s3 = scalar_lea.vmem (!%p1926_p11), [#allocation4], %s1177_s13 }
  0x71   : > { %1654 = dma.done.wait (%p2202_p0), %s471_s16, 2048  }
  0x72   : > { %1656 = vsyncadd (%p2202_p0), %s471_s16, 4294965248  ;;  %s480_s23 = scalar_lea.sflag [#allocation7], %s470_s14  ;;  %s1967_s12 = scalar_lea.vmem [#allocation6], %s1177_s13 }
  0x73   : > { %1658 = dma.done.wait (%p2202_p0), %s480_s23, 2048  }
  0x74   : > { %1660 = vsyncadd (%p2202_p0), %s480_s23, 4294965248  ;;  %p562_p2 = scmp.lt.s32.totalorder %s1683_s26, 3  ;;  %p566_p4 = scmp.lt.s32.totalorder %s1679_s25, 3 }
  0x75   : > { %s1182_s8 = sshll.u32 %s1675_s24, 4  ;;  %p586_p11 = scmp.lt.s32.totalorder %s1675_s24, 1 }
  0x76   : > { %s563_s17 = scalar_select %p562_p2, %s1683_s26, 3 }
  0x77   : > { %s1979_s19 = scalar_select %p566_p4, %s1679_s25, 3 }
  0x78   : > { %s1179_s21 = sshll.u32 %s563_s17, 3  ;;  %p577_p1 = scmp.lt.s32.totalorder %s1182_s8, 31 }
  0x79   : > { %s2203_s1 = sld [smem:[#allocation21_spill]]  ;;  %s1180_s18 = sshll.u32 %s1979_s19, 2 }
  0x7a   : > { %s571_s2 = sadd.s32 %s1180_s18, %s563_s17  ;;  %s1183_s7 = sshll.u32 %s1979_s19, 5 }
  0x7b   : > { %s1181_s20 = sshll.u32 %s571_s2, 3  ;;  %s1185_s14 = sshll.u32 %s1979_s19, 1 }
  0x7c   : > { %s1990_s23 = scalar_lea.vmem %s2161_s4, %s1181_s20  ;;  %s2230_s8 = smov (!%p577_p1, %s1182_s8), 31 }
  0x7d   : > { %s587_s15 = scalar_select %p586_p11, %s1675_s24, 1 }
  0x7e   : > { %s580_s22 = sadd.s32 %s1183_s7, %s2230_s8  ;;  %s2002_s18 = scalar_lea.vmem %s2168_s11, %s1179_s21 }
  0x7f   : > { %s565_s29 = scalar_lea.vmem %s2203_s1, %s1179_s21  ;;  %s1184_s2 = sshll.u32 %s580_s22, 3 }
  0x80   : > { %s2004_s0 = sadd.s32 %s1185_s14, %s587_s15  ;;  %s2009_s20 = scalar_lea.vmem %s2162_s5, %s1184_s2 }
  0x81   : > { %s590_s16 = scalar_lea.vmem %s2163_s6, %s2004_s0  ;;  %s2204_s27 = sld [smem:[#allocation25_spill]] }
  0x82   : > { %p606_p8 = scmp.eq.s32.totalorder %s1679_s25, 0  ;;  %p607_p9 = scmp.eq.s32.totalorder %s1675_s24, 0 }
  0x84   : > { %p608_p6 = pnand %p607_p9, %p606_p8 }
  0x85   : > { %v612_v0 = vld [vmem:[%s565_s29] sm:$0xff] (!%p608_p6) }
  0x86   : > { %611 = sbr.rel (%p608_p6) target bundleno = 141 (0x8d), region = 72  ;;  %613 = vst [vmem:[%s2002_s18] sm:$0xff] (!%p608_p6), %v612_v0 }
  0x87   : > { %s598_s1 = scalar_lea.vmem %s2204_s27, %s2004_s0 }
  0x8d PF: > { %s1188_s30 = sshll.u32 %s1683_s26, 2 }
  0x8e   : > { %s615_s21 = sadd.s32 %s1679_s25, %s1188_s30 }
  0x8f   : > { %s616_s14 = sld [smem:[#allocation3 + %s615_s21]] }
  0x95   : > { %p1189_p10 = scmp.le.s32.totalorder %s616_s14, 0 }
  0x96   : > { %v621_v1 = vld [vmem:[%s565_s29] sm:$0xff] (!%p1189_p10)  ;;  %v668_v4 = vld [vmem:[%s2009_s20 + $0x8] sm:$0xff] (!%p1189_p10)  ;;  %v1707_v6 = vmov (!%p1189_p10), 0.0|0.0   ;;  %v669_v10 = vld [vmem:[%s2009_s20 + $0x10] sm:$0xff] (!%p1189_p10)  ;;  %s2205_s27 = sld [smem:[#allocation22_spill]] (!%p1189_p10)  ;;  %vm1708_vm2 = vmmov (!%p1189_p10), 0  }
  0x97   : > { %620 = sbr.rel (%p1189_p10) target bundleno = 970 (0x3ca), region = 76  ;;  %v623_v2 = vmul.f32 (!%p1189_p10), %v621_v1, %v621_v1  ;;  %v667_v3 = vld [vmem:[%s2009_s20] sm:$0xff] (!%p1189_p10)  ;;  %1353 = vmatprep.subr.bf16.mxu0 (!%p1189_p10), %v1707_v6  ;;  %1377 = vmatprep.subr.bf16.mxu1 (!%p1189_p10), %v1707_v6  ;;  %v761_v8 = vld [vmem:[%s1961_s3 + $0x8] sm:$0xff] (!%p1189_p10)  ;;  %v670_v11 = vld [vmem:[%s2009_s20 + $0x18] sm:$0xff] (!%p1189_p10)  ;;  %v1709_v59 = vmov (!%p1189_p10), 0.0   ;;  %s2206_s15 = sld [smem:[#allocation23_spill]] (!%p1189_p10) }
  0x98   : > { %v760_v5 = vld [vmem:[%s1961_s3] sm:$0xff] (!%p1189_p10)  ;;  %v1354_v7 = vpack.c.bf16 (!%p1189_p10), %v668_v4, %v667_v3  ;;  %v762_v12 = vld [vmem:[%s1961_s3 + $0x10] sm:$0xff] (!%p1189_p10)  ;;  %v763_v13 = vld [vmem:[%s1961_s3 + $0x18] sm:$0xff] (!%p1189_p10)  ;;  %v1357_v14 = vpack.c.bf16 (!%p1189_p10), %v670_v11, %v669_v10  ;;  %1280 = vmatprep.mubr.msk.f32.mxu0 (!%p1189_p10), %vm1708_vm2, %v1709_v59  ;;  %1315 = vmatprep.mubr.msk.f32.mxu1 (!%p1189_p10), %vm1708_vm2, %v1709_v59 }
  0x99   : > { %624 = vadd.xlane.f32.xlu0 (!%p1189_p10), %v623_v2  ;;  %v1378_v9 = vpack.c.bf16 (!%p1189_p10), %v761_v8, %v760_v5  ;;  %v1381_v15 = vpack.c.bf16 (!%p1189_p10), %v763_v13, %v762_v12  ;;  %v671_v16 = vld [vmem:[%s2009_s20 + $0x20] sm:$0xff] (!%p1189_p10)  ;;  %v672_v17 = vld [vmem:[%s2009_s20 + $0x28] sm:$0xff] (!%p1189_p10)  ;;  %v673_v22 = vld [vmem:[%s2009_s20 + $0x30] sm:$0xff] (!%p1189_p10) }
  0x9a   : > { %1355 = vmatpush3.bf16.xpose.msra.mxu0 (!%p1189_p10), %v1354_v7  ;;  %v764_v18 = vld [vmem:[%s1961_s3 + $0x20] sm:$0xff] (!%p1189_p10)  ;;  %v765_v19 = vld [vmem:[%s1961_s3 + $0x28] sm:$0xff] (!%p1189_p10)  ;;  %v1360_v20 = vpack.c.bf16 (!%p1189_p10), %v672_v17, %v671_v16  ;;  %v674_v23 = vld [vmem:[%s2009_s20 + $0x38] sm:$0xff] (!%p1189_p10) }
  0x9b   : > { %1379 = vmatpush3.bf16.xpose.msra.mxu1 (!%p1189_p10), %v1378_v9  ;;  %1356 = vmatprep.subr.bf16.mxu0 (!%p1189_p10), %v1707_v6  ;;  %v1384_v21 = vpack.c.bf16 (!%p1189_p10), %v765_v19, %v764_v18  ;;  %v766_v24 = vld [vmem:[%s1961_s3 + $0x30] sm:$0xff] (!%p1189_p10)  ;;  %v767_v25 = vld [vmem:[%s1961_s3 + $0x38] sm:$0xff] (!%p1189_p10)  ;;  %v1363_v26 = vpack.c.bf16 (!%p1189_p10), %v674_v23, %v673_v22  ;;  %v675_v41 = vld [vmem:[%s2009_s20 + $0x40] sm:$0xff] (!%p1189_p10) }
  0x9c   : > { %1380 = vmatprep.subr.bf16.mxu1 (!%p1189_p10), %v1707_v6  ;;  %v1387_v27 = vpack.c.bf16 (!%p1189_p10), %v767_v25, %v766_v24  ;;  %v1190_v37 = vld [vmem:[%s2205_s27] ss:$0 sm:$0xff] (!%p1189_p10)  ;;  %v676_v42 = vld [vmem:[%s2009_s20 + $0x48] sm:$0xff] (!%p1189_p10)  ;;  %v677_v47 = vld [vmem:[%s2009_s20 + $0x50] sm:$0xff] (!%p1189_p10) }
  0x9d   : > { %v768_v43 = vld [vmem:[%s1961_s3 + $0x40] sm:$0xff] (!%p1189_p10)  ;;  %v1366_v44 = vpack.c.bf16 (!%p1189_p10), %v676_v42, %v675_v41  ;;  %v769_v45 = vld [vmem:[%s1961_s3 + $0x48] sm:$0xff] (!%p1189_p10)  ;;  %v678_v48 = vld [vmem:[%s2009_s20 + $0x58] sm:$0xff] (!%p1189_p10) }
  0x9e   : > { %v1390_v46 = vpack.c.bf16 %v769_v45, %v768_v43  ;;  %v770_v49 = vld [vmem:[%s1961_s3 + $0x50] sm:$0xff]  ;;  %v1369_v50 = vpack.c.bf16 %v678_v48, %v677_v47  ;;  %v771_v51 = vld [vmem:[%s1961_s3 + $0x58] sm:$0xff]  ;;  %v679_v53 = vld [vmem:[%s2009_s20 + $0x60] sm:$0xff]  ;;  %s878_s13 = scalar_select %p607_p9, 1, 0 }
  0x9f   : > { %v1393_v52 = vpack.c.bf16 %v771_v51, %v770_v49  ;;  %v680_v54 = vld [vmem:[%s2009_s20 + $0x68] sm:$0xff]  ;;  %v772_v55 = vld [vmem:[%s1961_s3 + $0x60] sm:$0xff]  ;;  %v681_v60 = vld [vmem:[%s2009_s20 + $0x70] sm:$0xff] }
  0xa0   : > { %v1372_v56 = vpack.c.bf16 %v680_v54, %v679_v53  ;;  %v773_v57 = vld [vmem:[%s1961_s3 + $0x68] sm:$0xff]  ;;  %v682_v61 = vld [vmem:[%s2009_s20 + $0x78] sm:$0xff]  ;;  %v774_v62 = vld [vmem:[%s1961_s3 + $0x70] sm:$0xff]  ;;  %v883_v54 = vlaneseq  ;;  %s879_s20 = scvt.s32.f32 %s878_s13 }
  0xa1   : > { %v1396_v58 = vpack.c.bf16 %v773_v57, %v772_v55  ;;  %v775_v63 = vld [vmem:[%s1961_s3 + $0x78] sm:$0xff]  ;;  %v1375_v0 = vpack.c.bf16 %v682_v61, %v681_v60  ;;  %v861_v11 = vld [vmem:[%s1967_s12] sm:$0xff]  ;;  %v862_v12 = vld [vmem:[%s1967_s12 + $0x8] sm:$0xff] }
  0xa2   : > { %1358 = vmatpush3.bf16.xpose.msra.mxu0 %v1357_v14  ;;  %v1191_v14 = vld [vmem:[%s2206_s15] ss:$0 sm:$0xff]  ;;  %v1402_v16 = vpack.c.bf16 %v862_v12, %v861_v11  ;;  %v863_v18 = vld [vmem:[%s1967_s12 + $0x10] sm:$0xff]  ;;  %v864_v19 = vld [vmem:[%s1967_s12 + $0x18] sm:$0xff]  ;;  %v884_v55 = vshrl.u32 %v883_v54, 7  ;;  %v880_v57 = vstv %s879_s20 }
  0xa3   : > { %1382 = vmatpush3.bf16.xpose.msra.mxu1 %v1381_v15  ;;  %1359 = vmatprep.subr.bf16.mxu0 %v1707_v6  ;;  %v866_v22 = vld [vmem:[%s1967_s12 + $0x28] sm:$0xff]  ;;  %v867_v24 = vld [vmem:[%s1967_s12 + $0x30] sm:$0xff]  ;;  %v868_v25 = vld [vmem:[%s1967_s12 + $0x38] sm:$0xff] }
  0xa4   : > { %1383 = vmatprep.subr.bf16.mxu1 %v1707_v6  ;;  %v1192_v41 = vld [vmem:[%s590_s16] ss:$0 sm:$0xff]  ;;  %s2208_s16 = scalar_lea.vmem %s2167_s10, %s1979_s19 }
  0xa5   : > { %v1193_v49 = vld [vmem:[%s598_s1] ss:$0 sm:$0xff] }
  0xaa   : > { %1361 = vmatpush3.bf16.xpose.msra.mxu0 %v1360_v20  ;;  %v1405_v20 = vpack.c.bf16 %v864_v19, %v863_v18 }
  0xab   : > { %1385 = vmatpush3.bf16.xpose.msra.mxu1 %v1384_v21  ;;  %1362 = vmatprep.subr.bf16.mxu0 %v1707_v6  ;;  %v865_v21 = vld [vmem:[%s1967_s12 + $0x20] sm:$0xff] }
  0xac   : > { %1386 = vmatprep.subr.bf16.mxu1 %v1707_v6  ;;  %v1408_v23 = vpack.c.bf16 %v866_v22, %v865_v21 }
  0xb2   : > { %1364 = vmatpush3.bf16.xpose.msra.mxu0 %v1363_v26  ;;  %v1411_v26 = vpack.c.bf16 %v868_v25, %v867_v24 }
  0xb3   : > { %1388 = vmatpush3.bf16.xpose.msra.mxu1 %v1387_v27  ;;  %1365 = vmatprep.subr.bf16.mxu0 %v1707_v6  ;;  %v869_v27 = vld [vmem:[%s1967_s12 + $0x40] sm:$0xff] }
  0xb4   : > { %1389 = vmatprep.subr.bf16.mxu1 %v1707_v6 }
  0xba   : > { %1367 = vmatpush3.bf16.xpose.msra.mxu0 %v1366_v44 }
  0xbb   : > { %1391 = vmatpush3.bf16.xpose.msra.mxu1 %v1390_v46  ;;  %1368 = vmatprep.subr.bf16.mxu0 %v1707_v6 }
  0xbc   : > { %1392 = vmatprep.subr.bf16.mxu1 %v1707_v6 }
  0xc2   : > { %1370 = vmatpush3.bf16.xpose.msra.mxu0 %v1369_v50 }
  0xc3   : > { %1394 = vmatpush3.bf16.xpose.msra.mxu1 %v1393_v52  ;;  %1371 = vmatprep.subr.bf16.mxu0 %v1707_v6 }
  0xc4   : > { %1395 = vmatprep.subr.bf16.mxu1 %v1707_v6 }
  0xca   : > { %1373 = vmatpush3.bf16.xpose.msra.mxu0 %v1372_v56  ;;  %v877_v56 = vld [vmem:[%s2208_s16] sm:$0x1] }
  0xcb   : > { %1397 = vmatpush3.bf16.xpose.msra.mxu1 %v1396_v58  ;;  %1374 = vmatprep.subr.bf16.mxu0 %v1707_v6  ;;  %v881_v58 = vmul.f32 %v880_v57, %v877_v56 }
  0xcc   : > { %1398 = vmatprep.subr.bf16.mxu1 %v1707_v6 }
  0xd2   : > { %1376 = vmatpush3.bf16.xpose.msra.mxu0 %v1375_v0 }
  0xd3   : > { %1401 = vmatprep.subr.bf16.mxu0 %v1707_v6 }
 0x126   : > { %v625_v28 = vpop.xlane.xlu0 %624 }
 0x127   : > { %v627_v29 = vmul.f32 0.0078125, %v625_v28  ;;  %v870_v28 = vld [vmem:[%s1967_s12 + $0x48] sm:$0xff] }
 0x129   : > { %v628_v30 = vadd.f32 1e-06, %v627_v29  ;;  %v1414_v29 = vpack.c.bf16 %v870_v28, %v869_v27 }
 0x12b   : > { %1527 = vrsqrt.f32 %v628_v30  ;;  %vm631_vm0 = vcmp.eq.f32.partialorder %v628_v30, inf  ;;  %v634_v33 = vand.u32 2147483648, %v628_v30  ;;  %vm633_vm1 = vcmp.eq.f32.partialorder %v628_v30, 0.0 }
 0x135   : > { %v1528_v31 = vpop.eup %1527 }
 0x136   : > { %v630_v32 = vmul.f32 %v1528_v31, %v628_v30  ;;  %v872_v31 = vld [vmem:[%s1967_s12 + $0x58] sm:$0xff] }
 0x138   : > { %v632_v34 = vsel %vm631_vm0, %v628_v30, %v630_v32  ;;  %v871_v30 = vld [vmem:[%s1967_s12 + $0x50] sm:$0xff] }
 0x139   : > { %v635_v35 = vsel %vm633_vm1, %v634_v33, %v632_v34  ;;  %v1417_v32 = vpack.c.bf16 %v872_v31, %v871_v30  ;;  %v873_v33 = vld [vmem:[%s1967_s12 + $0x60] sm:$0xff]  ;;  %v874_v34 = vld [vmem:[%s1967_s12 + $0x68] sm:$0xff] }
 0x13a   : > { %1529 = vrcp.f32 %v635_v35  ;;  %v1420_v35 = vpack.c.bf16 %v874_v34, %v873_v33 }
 0x144   : > { %v1530_v36 = vpop.eup %1529 }
 0x145   : > { %v637_v38 = vmul.f32 %v1530_v36, %v621_v1  ;;  %v1399_v1 = vpack.c.bf16 %v775_v63, %v774_v62  ;;  %v875_v36 = vld [vmem:[%s1967_s12 + $0x70] sm:$0xff] }
 0x147   : > { %v644_v39 = vmul.f32 %v1190_v37, %v637_v38  ;;  %1400 = vmatpush3.bf16.xpose.msra.mxu1 %v1399_v1  ;;  %v876_v37 = vld [vmem:[%s1967_s12 + $0x78] sm:$0xff]  ;;  %v958_v1 = vld [vmem:[%s2002_s18] sm:$0xff] }
 0x148   : > { %v1423_v38 = vpack.c.bf16 %v876_v37, %v875_v36 }
 0x149   : > { %v646_v40 = vmul.f32 %v644_v39, %v644_v39 }
 0x14b   : > { %647 = vadd.xlane.f32.xlu0 %v646_v40  ;;  %v1710_v40 = vmov 0  }
 0x14c   : > { %1525 = vset.pattern.permute.xlu1 %v1710_v40  ;;  %1526 = vset.pattern.permute.xlu0 %v1710_v40 }
 0x1d8   : > { %v648_v2 = vpop.xlane.xlu0 %647 }
 0x1d9   : > { %v649_v3 = vmul.f32 0.0078125, %v648_v2 }
 0x1db   : > { %v650_v4 = vadd.f32 1e-07, %v649_v3 }
 0x1dd   : > { %1531 = vrsqrt.f32 %v650_v4  ;;  %vm653_vm3 = vcmp.eq.f32.partialorder %v650_v4, inf  ;;  %v656_v8 = vand.u32 2147483648, %v650_v4  ;;  %vm655_vm4 = vcmp.eq.f32.partialorder %v650_v4, 0.0 }
 0x1e7   : > { %v1532_v5 = vpop.eup %1531 }
 0x1e8   : > { %v652_v7 = vmul.f32 %v1532_v5, %v650_v4 }
 0x1ea   : > { %v654_v9 = vsel %vm653_vm3, %v650_v4, %v652_v7 }
 0x1eb   : > { %v657_v10 = vsel %vm655_vm4, %v656_v8, %v654_v9 }
 0x1ec   : > { %1533 = vrcp.f32 %v657_v10 }
 0x1f6   : > { %v1534_v13 = vpop.eup %1533 }
 0x1f7   : > { %v659_v15 = vmul.f32 %v1534_v13, %v644_v39  ;;  %v959_v39 = vld [vmem:[%s1990_s23] sm:$0xff] }
 0x1f8   : > { %962 = vperm.xlu1 %1525, %v959_v39  }
 0x1f9   : > { %v666_v17 = vmul.f32 %v1191_v14, %v659_v15 }
 0x1fb   : > { %1281 = vmatmul.mubr.f32.vlgmr.msra.gmra.mrb[0].mxu0 %v666_v17  ;;  %1316 = vmatmul.mubr.f32.vlgmr.msra.gmra.mrb[0].mxu1 %v666_v17 }
 0x1fc   : > { %1403 = vmatpush3.bf16.xpose.msra.mxu0 %v1402_v16  ;;  %1350 = vmatprep.mubr.msk.f32.mxu0 %vm1708_vm2, %v1709_v59  ;;  %v885_v59 = vsub.s32 0, %v884_v55 }
 0x1fd   : > { %1404 = vmatprep.subr.bf16.mxu0 %v1707_v6 }
 0x1fe   : > { %v886_v60 = vrot.slane %v881_v58, %v885_v59 }
 0x204   : > { %1406 = vmatpush3.bf16.xpose.msra.mxu0 %v1405_v20 }
 0x205   : > { %1407 = vmatprep.subr.bf16.mxu0 %v1707_v6 }
 0x20c   : > { %1409 = vmatpush3.bf16.xpose.msra.mxu0 %v1408_v23 }
 0x20d   : > { %1410 = vmatprep.subr.bf16.mxu0 %v1707_v6 }
 0x214   : > { %1412 = vmatpush3.bf16.xpose.msra.mxu0 %v1411_v26 }
 0x215   : > { %1413 = vmatprep.subr.bf16.mxu0 %v1707_v6 }
 0x21c   : > { %1415 = vmatpush3.bf16.xpose.msra.mxu0 %v1414_v29 }
 0x21d   : > { %1416 = vmatprep.subr.bf16.mxu0 %v1707_v6 }
 0x224   : > { %1418 = vmatpush3.bf16.xpose.msra.mxu0 %v1417_v32 }
 0x225   : > { %1419 = vmatprep.subr.bf16.mxu0 %v1707_v6 }
 0x22c   : > { %1421 = vmatpush3.bf16.xpose.msra.mxu0 %v1420_v35 }
 0x22d   : > { %1422 = vmatprep.subr.bf16.mxu0 %v1707_v6 }
 0x234   : > { %1424 = vmatpush3.bf16.xpose.msra.mxu0 %v1423_v38 }
 0x277   : > { %v963_v62 = vpop.permute.xlu1 %962 }
 0x2ce   : > { %v756_v42 = vpop.f32.mrb[0].mxu0  ;;  %v849_v43 = vpop.f32.mrb[0].mxu1 }
 0x2cf   : > { %v757_v44 = vadd.f32 %v1192_v41, %v756_v42  ;;  %v1282_v6 = vpop.f32.mrb[1].mxu0  ;;  %v1317_v45 = vpop.f32.mrb[1].mxu1  ;;  %v850_v52 = vadd.f32 %v1193_v49, %v849_v43 }
 0x2d1   : > { %v1194_v46 = vmul.f32 -1.442695, %v757_v44 }
 0x2d3   : > { %1535 = vpow2.f32 %v1194_v46 }
 0x2dd   : > { %v1536_v47 = vpop.eup %1535 }
 0x2de   : > { %v856_v48 = vadd.f32 1.0, %v1536_v47 }
 0x2e0   : > { %1537 = vrcp.f32 %v856_v48 }
 0x2ea   : > { %v1538_v50 = vpop.eup %1537 }
 0x2eb   : > { %v859_v51 = vmul.f32 %v1538_v50, %v757_v44 }
 0x2ed   : > { %v860_v53 = vmul.f32 %v859_v51, %v850_v52 }
 0x2ef   : > { %1351 = vmatmul.mubr.f32.vlgmr.msra.gmra.mrb[2].mxu0 %v860_v53 }
 0x3c2   : > { %v954_v61 = vpop.f32.mrb[2].mxu0 }
 0x3c3   : > { %v955_v63 = vadd.f32 %v954_v61, %v886_v60  ;;  %v1352_v0 = vpop.f32.mrb[3].mxu0 }
 0x3c5   : > { %v965_v2 = vmul.f32 %v963_v62, %v955_v63 }
 0x3c7   : > { %v966_v3 = vadd.f32 %v965_v2, %v958_v1 }
 0x3c9   : > { %967 = vst [vmem:[%s2002_s18] sm:$0xff] %v966_v3 }
 0x3ca PF: > { %s2209_s0 = sld [smem:[#allocation16_spill]]  ;;  %s2210_s22 = sld [smem:[#allocation11_spill]] }
 0x3cb   : > { %s2212_s23 = sld [smem:[#allocation20_spill]]  ;;  %s2213_s24 = sld [smem:[#allocation13_spill]] }
 0x3cc   : > { %s2214_s25 = sld [smem:[#allocation14_spill]]  ;;  %s2215_s26 = sld [smem:[#allocation15_spill]] }
 0x3cd   : > { %s2216_s27 = sld [smem:[#allocation17_spill]]  ;;  %s2217_s28 = sld [smem:[#allocation18_spill]] }
 0x3ce   : > { %s2218_s29 = sld [smem:[#allocation19_spill]] }
 0x3d0   : > { %s33_s30 = sadd.s32 1, %s2209_s0   ;;  %s2211_s0 = sld [smem:[#allocation12_spill]] }
 0x3d1   : > { %p30_p12 = scmp.ge.s32.totalorder %s33_s30, 34  }
 0x3d3   :  { %32 = sbr.rel (!%p30_p12) target bundleno = 25 (0x19), region = 139 }
 0x3da   :  { %987 = vsyncpa [#allocation5], 1 }
 0x3db   :  { %989 = vsyncpa [#allocation5 + $0x1], 1 }
 0x3dc   :  { %990 = vsyncpa [#allocation7], 1 }
 0x3dd   :  { %992 = vsyncpa [#allocation7 + $0x1], 1 }

</bundles_post_ra>
